<compile_context>
chip_gen: v7x
topology: tpu7x:2x2x1
jax: 0.10.0
libtpu: 0.0.40
codegen_flags: <defaults>
</compile_context>

<pallas_src>
import functools

import jax
import jax.numpy as jnp
from jax.experimental import pallas as pl
from jax.experimental.pallas import tpu as pltpu


def _conv_block_kernel(x_ref, w_ref, b_ref, o_ref, p_ref, *,
                       K, Wp, Cin, Q, n_tiles):
    """One (batch, output-row-tile) grid step.

    x_ref : (1, Cin, L)   flat channel-major padded input (resident per image)
    w_ref : (Cout, R)     weights, R = K*K*Cin, row order (di, dj, ci)
    b_ref : (Cout, 1)     bias (f32)
    o_ref : (1, Cout, Q)  channel-major flat output tile (Q = TH*Wp lanes)
    p_ref : (R, Q)        VMEM scratch: im2col patch matrix, lane-dense rows
    """
    # Flat output offset of this row tile.  Static 0 in the single-tile case
    # (common small/medium images) so every slice below has a static start.
    q0 = 0 if n_tiles == 1 else pl.program_id(1) * Q

    # im2col via the flat-shift trick (stride 1): the patch rows for tap
    # (di, dj) are the contiguous slice x[:, q0+di*Wp+dj : ...+Q] — a full
    # lane-width (Cin, Q) copy per tap; no masked stores, no relayout reshape.
    for di in range(K):
        for dj in range(K):
            r = (di * K + dj) * Cin
            shift = di * Wp + dj
            p_ref[r:r + Cin, :] = x_ref[0, :, pl.ds(q0 + shift, Q)]

    # Single MXU matmul in NN form, f32 accumulation:
    # (Cout, R) . (R, Q) -> (Cout, Q), contracting rhs dim 0.
    acc = jax.lax.dot_general(
        w_ref[...], p_ref[...],
        dimension_numbers=(((1,), (0,)), ((), ())),
        preferred_element_type=jnp.float32)

    o_ref[0] = jnp.maximum(acc + b_ref[...], 0.0).astype(o_ref.dtype)  # bias+ReLU


def _pick_row_tile(Ho, Wp, n_batch, *, q_target=2048):
    """Output-row tile TH.

    Multi-tile runs require (TH*Wp) % 128 == 0 so the output BlockSpec stays
    lane-dense and legal under the (8,128) rule; a single whole-image tile
    (block == full dim) is always legal.  Prefer the largest lane-dense tile
    under the lane target; the whole image wins when it fits the target unless
    a split is needed to give v7x's second TensorCore work (n_batch == 1).
    """
    dense = [d for d in range(1, Ho) if Ho % d == 0 and (d * Wp) % 128 == 0]
    in_target = [d for d in dense if d * Wp <= q_target]
    whole_ok = Ho * Wp <= q_target
    if whole_ok and (n_batch >= 2 or not dense):
        return Ho
    if in_target:
        return max(in_target)
    if dense:
        return min(dense)
    return Ho


def _vmem_limit_bytes():
    # Explicit scoped-VMEM limit: v5e/v6e have 128 MiB physical, v7x only
    # 64 MiB (32 MiB default scoped) — ask for ~3/4 of what the chip has.
    try:
        cap = pltpu.get_tpu_info().vmem_capacity_bytes
    except Exception:
        cap = 64 * 1024 * 1024
    return int(min(cap * 3 // 4, 96 * 1024 * 1024))


def prepare_params(weight_oihw, bias, compute_dtype=jnp.float32):
    """OIHW weights -> (Cout, K*K*Cin) im2col layout (row order di, dj, ci) and
    (Cout, 1) f32 bias.  Hoist to model init so the relayout runs once."""
    Cout, Cin, K, _ = weight_oihw.shape
    w2 = jnp.transpose(weight_oihw, (0, 2, 3, 1)).reshape(Cout, K * K * Cin)
    return w2.astype(compute_dtype), bias.reshape(Cout, 1).astype(jnp.float32)


def conv_block(x_nchw, weight_oihw, bias, *, stride, padding,
               compute_dtype=None, prepared=None):
    """Forward pass of ConvBlock: ReLU(Conv2d(ReflectionPad2d(x))). NCHW in/out."""
    out_dtype = x_nchw.dtype
    if compute_dtype is None:
        # bf16 operands (f32 accumulation) halve DMA/VMEM bytes and double MXU
        # throughput on v6e/v7x; default stays f32 for exact results.
        compute_dtype = out_dtype

    N, Cin, H, W = x_nchw.shape
    Cout, Cin_w, K, K2 = weight_oihw.shape
    assert Cin_w == Cin and K == K2

    if stride != 1:
        # TODO(synk): flat-shift im2col assumes stride 1 (ConvBlock's usual
        # config); strided blocks fall back to the XLA convolution.
        return _reference(x_nchw, weight_oihw, bias,
                          stride=stride, padding=padding).astype(out_dtype)

    # --- wrapper glue (plain JAX, channel-major end-to-end) -----------------
    # TODO(synk): fuse the reflection pad into the kernel (clamped row reads /
    # scalar-prefetch index table) to drop this one remaining extra HBM pass.
    xp = jnp.pad(x_nchw,
                 ((0, 0), (0, 0), (padding, padding), (padding, padding)),
                 mode="reflect")
    Hp, Wp = H + 2 * padding, W + 2 * padding
    Ho, Wo = Hp - K + 1, Wp - K + 1

    # Flatten each padded channel plane (a free reshape for NCHW) and pad the
    # tail so every shifted slice stays in bounds and the resident block is a
    # whole number of 128-lane vregs.
    L = -(-(Hp * Wp + (K - 1)) // 128) * 128
    xf = xp.reshape(N, Cin, Hp * Wp).astype(compute_dtype)
    xf = jnp.pad(xf, ((0, 0), (0, 0), (0, L - Hp * Wp)))

    if prepared is None:
        prepared = prepare_params(weight_oihw, bias, compute_dtype)
    w2, b2 = prepared
    R = K * K * Cin

    TH = _pick_row_tile(Ho, Wp, N)
    n_tiles = Ho // TH
    Q = TH * Wp

    kernel = functools.partial(_conv_block_kernel,
                               K=K, Wp=Wp, Cin=Cin, Q=Q, n_tiles=n_tiles)

    out_flat = pl.pallas_call(
        kernel,
        out_shape=jax.ShapeDtypeStruct((N, Cout, Ho * Wp), out_dtype),
        grid=(N, n_tiles),
        in_specs=[
            # Whole flat image resident per batch step (tiny at these channel
            # counts).  TODO(synk): on v7x at large Cin*H*W switch to halo
            # row-window DMA (memory_space=pl.ANY + make_async_copy) so the
            # resident block stays inside the 64 MiB VMEM.
            pl.BlockSpec((1, Cin, L), lambda n, t: (n, 0, 0)),
            # Constant block index across the grid.  TODO(synk): single-buffer
            # weight/bias (pipeline_mode=pl.Buffered(1)) to drop the redundant
            # second VMEM copy.
            pl.BlockSpec((Cout, R), lambda n, t: (0, 0)),
            pl.BlockSpec((Cout, 1), lambda n, t: (0, 0)),
        ],
        out_specs=pl.BlockSpec((1, Cout, Q), lambda n, t: (n, 0, t)),
        scratch_shapes=[pltpu.VMEM((R, Q), compute_dtype)],
        compiler_params=pltpu.CompilerParams(
            dimension_semantics=("parallel", "parallel"),
            vmem_limit_bytes=_vmem_limit_bytes()),
    )(xf, w2, b2)

    # Channel-major flat output -> NCHW: free reshape plus slicing off the
    # (K-1) over-computed columns per row (price of lane-dense im2col rows).
    return out_flat.reshape(N, Cout, Ho, Wp)[..., :Wo]


def _reference(x_nchw, weight_oihw, bias, *, stride, padding):
    """Pure-JAX reference: ReflectionPad2d + Conv2d + ReLU in NCHW."""
    xp = jnp.pad(x_nchw,
                 ((0, 0), (0, 0), (padding, padding), (padding, padding)),
                 mode="reflect")
    y = jax.lax.conv_general_dilated(
        xp, weight_oihw, window_strides=(stride, stride), padding="VALID",
        dimension_numbers=("NCHW", "OIHW", "NCHW"))
    return jnp.maximum(y + bias.reshape(1, -1, 1, 1), 0.0)


if __name__ == "__main__":
    # ConvBlock(in_channels=4, out_channels=8, kernel_size=3, stride=1, padding=1)
    in_channels, out_channels, kernel_size, stride, padding = 4, 8, 3, 1, 1
    N, H, W = 2, 16, 16

    key = jax.random.PRNGKey(0)
    kx, kw, kb = jax.random.split(key, 3)
    x = jax.random.normal(kx, (N, in_channels, H, W), dtype=jnp.float32)
    fan_in = in_channels * kernel_size * kernel_size
    bound = 1.0 / (fan_in ** 0.5)
    weight = jax.random.uniform(
        kw, (out_channels, in_channels, kernel_size, kernel_size),
        minval=-bound, maxval=bound, dtype=jnp.float32)
    bias = jax.random.uniform(
        kb, (out_channels,), minval=-bound, maxval=bound, dtype=jnp.float32)

    ref = _reference(x, weight, bias, stride=stride, padding=padding)

    # f32 path (exact; default).
    out = jax.block_until_ready(
        conv_block(x, weight, bias, stride=stride, padding=padding))
    assert out.shape == ref.shape == (N, out_channels, H, W)
    assert jnp.allclose(out, ref, atol=1e-4, rtol=1e-4), "f32 mismatch vs reference"

    # bf16-operand path (recommended on v6e/v7x; f32 accumulation) — looser
    # tolerance per the review note.
    out_bf16 = jax.block_until_ready(
        conv_block(x, weight, bias, stride=stride, padding=padding,
                   compute_dtype=jnp.bfloat16))
    assert jnp.allclose(out_bf16, ref, atol=1e-1, rtol=1e-1), "bf16 mismatch vs reference"

    print("KERNEL_OK")
</pallas_src>

<mosaic_0001>
module attributes {stable_mosaic.version = 11 : i64} {
  func.func @_conv_block_kernel(%arg0: i32, %arg1: i32, %arg2: memref<1x4x384xf32, #tpu.memory_space<vmem>>, %arg3: memref<8x36xf32, #tpu.memory_space<vmem>>, %arg4: memref<8x1xf32, #tpu.memory_space<vmem>>, %arg5: memref<1x8x288xf32, #tpu.memory_space<vmem>>, %arg6: memref<36x288xf32, #tpu.memory_space<vmem>>) attributes {dimension_semantics = [#tpu.dimension_semantics<parallel>, #tpu.dimension_semantics<parallel>], iteration_bounds = array<i64: 2, 1>, scalar_prefetch = 0 : i64, scratch_operands = 1 : i64, tpu.core_type = #tpu.core_type<tc>, window_params = [{transform_indices = @transform_0, window_bounds = array<i64: 1, 4, 384>}, {pipeline_mode = #tpu.pipeline_mode<synchronous>, transform_indices = @transform_1, window_bounds = array<i64: 8, 36>}, {pipeline_mode = #tpu.pipeline_mode<synchronous>, transform_indices = @transform_2, window_bounds = array<i64: 8, 1>}, {transform_indices = @transform_3, window_bounds = array<i64: 1, 8, 288>}]} {
    %c0 = arith.constant 0 : index
    %c0_0 = arith.constant 0 : index
    %c0_1 = arith.constant 0 : index
    %0 = vector.load %arg2[%c0, %c0_0, %c0_1] : memref<1x4x384xf32, #tpu.memory_space<vmem>>, vector<1x4x288xf32>
    %1 = vector.shape_cast %0 : vector<1x4x288xf32> to vector<4x288xf32>
    %c0_2 = arith.constant 0 : index
    %c0_3 = arith.constant 0 : index
    %2 = vector.load %arg6[%c0_2, %c0_3] : memref<36x288xf32, #tpu.memory_space<vmem>>, vector<4x288xf32>
    tpu.vector_store %arg6[%c0_2, %c0_3], %1 {strides = array<i32>} : memref<36x288xf32, #tpu.memory_space<vmem>>, vector<4x288xf32>,
    %c0_4 = arith.constant 0 : index
    %c0_5 = arith.constant 0 : index
    %c1 = arith.constant 1 : index
    %3 = vector.load %arg2[%c0_4, %c0_5, %c1] : memref<1x4x384xf32, #tpu.memory_space<vmem>>, vector<1x4x288xf32>
    %4 = vector.shape_cast %3 : vector<1x4x288xf32> to vector<4x288xf32>
    %c4 = arith.constant 4 : index
    %c0_6 = arith.constant 0 : index
    %5 = vector.load %arg6[%c4, %c0_6] : memref<36x288xf32, #tpu.memory_space<vmem>>, vector<4x288xf32>
    tpu.vector_store %arg6[%c4, %c0_6], %4 {strides = array<i32>} : memref<36x288xf32, #tpu.memory_space<vmem>>, vector<4x288xf32>,
    %c0_7 = arith.constant 0 : index
    %c0_8 = arith.constant 0 : index
    %c2 = arith.constant 2 : index
    %6 = vector.load %arg2[%c0_7, %c0_8, %c2] : memref<1x4x384xf32, #tpu.memory_space<vmem>>, vector<1x4x288xf32>
    %7 = vector.shape_cast %6 : vector<1x4x288xf32> to vector<4x288xf32>
    %c8 = arith.constant 8 : index
    %c0_9 = arith.constant 0 : index
    %8 = vector.load %arg6[%c8, %c0_9] : memref<36x288xf32, #tpu.memory_space<vmem>>, vector<4x288xf32>
    tpu.vector_store %arg6[%c8, %c0_9], %7 {strides = array<i32>} : memref<36x288xf32, #tpu.memory_space<vmem>>, vector<4x288xf32>,
    %c0_10 = arith.constant 0 : index
    %c0_11 = arith.constant 0 : index
    %c18 = arith.constant 18 : index
    %9 = vector.load %arg2[%c0_10, %c0_11, %c18] : memref<1x4x384xf32, #tpu.memory_space<vmem>>, vector<1x4x288xf32>
    %10 = vector.shape_cast %9 : vector<1x4x288xf32> to vector<4x288xf32>
    %c12 = arith.constant 12 : index
    %c0_12 = arith.constant 0 : index
    %11 = vector.load %arg6[%c12, %c0_12] : memref<36x288xf32, #tpu.memory_space<vmem>>, vector<4x288xf32>
    tpu.vector_store %arg6[%c12, %c0_12], %10 {strides = array<i32>} : memref<36x288xf32, #tpu.memory_space<vmem>>, vector<4x288xf32>,
    %c0_13 = arith.constant 0 : index
    %c0_14 = arith.constant 0 : index
    %c19 = arith.constant 19 : index
    %12 = vector.load %arg2[%c0_13, %c0_14, %c19] : memref<1x4x384xf32, #tpu.memory_space<vmem>>, vector<1x4x288xf32>
    %13 = vector.shape_cast %12 : vector<1x4x288xf32> to vector<4x288xf32>
    %c16 = arith.constant 16 : index
    %c0_15 = arith.constant 0 : index
    %14 = vector.load %arg6[%c16, %c0_15] : memref<36x288xf32, #tpu.memory_space<vmem>>, vector<4x288xf32>
    tpu.vector_store %arg6[%c16, %c0_15], %13 {strides = array<i32>} : memref<36x288xf32, #tpu.memory_space<vmem>>, vector<4x288xf32>,
    %c0_16 = arith.constant 0 : index
    %c0_17 = arith.constant 0 : index
    %c20 = arith.constant 20 : index
    %15 = vector.load %arg2[%c0_16, %c0_17, %c20] : memref<1x4x384xf32, #tpu.memory_space<vmem>>, vector<1x4x288xf32>
    %16 = vector.shape_cast %15 : vector<1x4x288xf32> to vector<4x288xf32>
    %c20_18 = arith.constant 20 : index
    %c0_19 = arith.constant 0 : index
    %17 = vector.load %arg6[%c20_18, %c0_19] : memref<36x288xf32, #tpu.memory_space<vmem>>, vector<4x288xf32>
    tpu.vector_store %arg6[%c20_18, %c0_19], %16 {strides = array<i32>} : memref<36x288xf32, #tpu.memory_space<vmem>>, vector<4x288xf32>,
    %c0_20 = arith.constant 0 : index
    %c0_21 = arith.constant 0 : index
    %c36 = arith.constant 36 : index
    %18 = vector.load %arg2[%c0_20, %c0_21, %c36] : memref<1x4x384xf32, #tpu.memory_space<vmem>>, vector<1x4x288xf32>
    %19 = vector.shape_cast %18 : vector<1x4x288xf32> to vector<4x288xf32>
    %c24 = arith.constant 24 : index
    %c0_22 = arith.constant 0 : index
    %20 = vector.load %arg6[%c24, %c0_22] : memref<36x288xf32, #tpu.memory_space<vmem>>, vector<4x288xf32>
    tpu.vector_store %arg6[%c24, %c0_22], %19 {strides = array<i32>} : memref<36x288xf32, #tpu.memory_space<vmem>>, vector<4x288xf32>,
    %c0_23 = arith.constant 0 : index
    %c0_24 = arith.constant 0 : index
    %c37 = arith.constant 37 : index
    %21 = vector.load %arg2[%c0_23, %c0_24, %c37] : memref<1x4x384xf32, #tpu.memory_space<vmem>>, vector<1x4x288xf32>
    %22 = vector.shape_cast %21 : vector<1x4x288xf32> to vector<4x288xf32>
    %c28 = arith.constant 28 : index
    %c0_25 = arith.constant 0 : index
    %23 = vector.load %arg6[%c28, %c0_25] : memref<36x288xf32, #tpu.memory_space<vmem>>, vector<4x288xf32>
    tpu.vector_store %arg6[%c28, %c0_25], %22 {strides = array<i32>} : memref<36x288xf32, #tpu.memory_space<vmem>>, vector<4x288xf32>,
    %c0_26 = arith.constant 0 : index
    %c0_27 = arith.constant 0 : index
    %c38 = arith.constant 38 : index
    %24 = vector.load %arg2[%c0_26, %c0_27, %c38] : memref<1x4x384xf32, #tpu.memory_space<vmem>>, vector<1x4x288xf32>
    %25 = vector.shape_cast %24 : vector<1x4x288xf32> to vector<4x288xf32>
    %c32 = arith.constant 32 : index
    %c0_28 = arith.constant 0 : index
    %26 = vector.load %arg6[%c32, %c0_28] : memref<36x288xf32, #tpu.memory_space<vmem>>, vector<4x288xf32>
    tpu.vector_store %arg6[%c32, %c0_28], %25 {strides = array<i32>} : memref<36x288xf32, #tpu.memory_space<vmem>>, vector<4x288xf32>,
    %c0_29 = arith.constant 0 : index
    %c0_30 = arith.constant 0 : index
    %27 = vector.load %arg3[%c0_29, %c0_30] : memref<8x36xf32, #tpu.memory_space<vmem>>, vector<8x36xf32>
    %c0_31 = arith.constant 0 : index
    %c0_32 = arith.constant 0 : index
    %28 = vector.load %arg6[%c0_31, %c0_32] : memref<36x288xf32, #tpu.memory_space<vmem>>, vector<36x288xf32>
    %cst = arith.constant dense<0.000000e+00> : vector<8x288xf32>
    %29 = tpu.matmul %27, %28, %cst {dimension_numbers = #tpu.dot_dimension_numbers<[1], [0], [0], [1], [0, 0, 1, 1], [], []>} : vector<8x36xf32>, vector<36x288xf32>, vector<8x288xf32> -> vector<8x288xf32>
    %c0_33 = arith.constant 0 : index
    %c0_34 = arith.constant 0 : index
    %30 = vector.load %arg4[%c0_33, %c0_34] : memref<8x1xf32, #tpu.memory_space<vmem>>, vector<8x1xf32>
    %31 = vector.broadcast %30 : vector<8x1xf32> to vector<8x288xf32>
    %32 = arith.addf %29, %31 : vector<8x288xf32>
    %cst_35 = arith.constant 0.000000e+00 : f32
    %33 = vector.broadcast %cst_35 : f32 to vector<8x288xf32>
    %34 = arith.maximumf %32, %33 : vector<8x288xf32>
    %c0_36 = arith.constant 0 : index
    %c0_37 = arith.constant 0 : index
    %c0_38 = arith.constant 0 : index
    %35 = vector.load %arg5[%c0_36, %c0_37, %c0_38] : memref<1x8x288xf32, #tpu.memory_space<vmem>>, vector<1x8x288xf32>
    %36 = vector.shape_cast %35 : vector<1x8x288xf32> to vector<8x288xf32>
    %37 = vector.shape_cast %34 : vector<8x288xf32> to vector<1x8x288xf32>
    tpu.vector_store %arg5[%c0_36, %c0_37, %c0_38], %37 {strides = array<i32>} : memref<1x8x288xf32, #tpu.memory_space<vmem>>, vector<1x8x288xf32>,
    return
  }
  func.func @transform_0(%arg0: i32, %arg1: i32) -> (i32, i32, i32) {
    %c0_i32 = arith.constant 0 : i32
    %c0_i32_0 = arith.constant 0 : i32
    %c0_i32_1 = arith.constant 0 : i32
    return %arg0, %c0_i32, %c0_i32_0 : i32, i32, i32
  }
  func.func @transform_1(%arg0: i32, %arg1: i32) -> (i32, i32) {
    %c0_i32 = arith.constant 0 : i32
    %c0_i32_0 = arith.constant 0 : i32
    %c0_i32_1 = arith.constant 0 : i32
    return %c0_i32, %c0_i32_0 : i32, i32
  }
  func.func @transform_2(%arg0: i32, %arg1: i32) -> (i32, i32) {
    %c0_i32 = arith.constant 0 : i32
    %c0_i32_0 = arith.constant 0 : i32
    %c0_i32_1 = arith.constant 0 : i32
    return %c0_i32, %c0_i32_0 : i32, i32
  }
  func.func @transform_3(%arg0: i32, %arg1: i32) -> (i32, i32, i32) {
    %c0_i32 = arith.constant 0 : i32
    %c0_i32_0 = arith.constant 0 : i32
    return %arg0, %c0_i32, %arg1 : i32, i32, i32
  }
}

</mosaic_0001>

<bundles_post_ra>
// kernel: tpu_custom_call.1
= control target key start
LH: loop header
LB: loop body
LE: loop exit
PB: predicated region body
PF: predicated region fallthrough
CT: control target
= control target key end

     0   :  { %8 = vsyncpa [#allocation4], 0  ;;  %s1154_s0 = inlined_call_operand.hbm [shape: f32[2,4,384], index: 0, kind: input, shape index: {}]   ;;  %s1155_s1 = inlined_call_operand.vmem [shape: f32[8,36], index: 1, kind: input, shape index: {}]   ;;  %s1156_s2 = inlined_call_operand.vmem [shape: f32[8,1], index: 2, kind: input, shape index: {}]   ;;  %s1157_s3 = inlined_call_operand.hbm [shape: f32[2,8,288], index: 3, kind: output, shape index: {}]  }
   0x1   :  { %10 = vsyncpa [#allocation4 + $0x1], 0 }
   0x2   :  { %11 = vsyncpa [#allocation5], 0 }
   0x3   :  { %13 = vsyncpa [#allocation5 + $0x1], 0  ;;  %s939_s12 = smov 0   ;;  %s941_s13 = smov 0  }
   0x4   :  { %s943_s14 = smov 0   ;;  %s945_s15 = smov 0  }
   0x5   :  { %s947_s16 = smov 0   ;;  %s949_s17 = smov 0  }
   0x6 LB: > { %s658_s18 = sadd.s32 4294967295, %s903_s17   ;;  %s659_s19 = sadd.s32 4294967294, %s903_s17   ;;  %s903_s17 = sphi %s949_s17, %s19_s17   ;;  %s899_s16 = sphi %s947_s16, %s1172_s16   ;;  %s895_s15 = sphi %s945_s15, %s1171_s15   ;;  %s891_s14 = sphi %s943_s14, %s1170_s14   ;;  %s887_s13 = sphi %s941_s13, %s1169_s13   ;;  %s883_s12 = sphi %s939_s12, %s1168_s12  }
   0x7   : > { %s31_s20 = sadd.s32 1, %s899_s16  ;;  %s38_s21 = sadd.s32 1, %s891_s14 }
   0x8   : > { %p33_p0 = scmp.ge.s32.totalorder %s31_s20, 2  ;;  %p45_p1 = scmp.ne.s32.totalorder %s891_s14, %s887_s13 }
   0x9   : > { %p46_p2 = scmp.eq.s32.totalorder %s903_s17, 0  ;;  %p51_p3 = scmp.ne.s32.totalorder %s887_s13, %s883_s12 }
   0xa   : > { %s1174_s20 = smov (%p33_p0, %s31_s20), 0  ;;  %p52_p5 = scmp.eq.s32.totalorder %s658_s18, 0 }
   0xb   : > { %p980_p4 = por %p46_p2, %p45_p1  ;;  %s35_s23 = ssub.s32 %s899_s16, %s1174_s20 }
   0xc   : > { %p119_p6 = scmp.eq.s32.totalorder %s658_s18, 1  ;;  %p36_p7 = scmp.eq.s32.totalorder %s35_s23, 0 }
   0xd   : > { %p986_p8 = por %p52_p5, %p51_p3  ;;  %p125_p10 = scmp.eq.s32.totalorder %s659_s19, 1 }
   0xe   : > { %p990_p9 = por %p119_p6, %p45_p1  ;;  %p722_p13 = scmp.lt.s32.totalorder %s903_s17, 2 }
   0xf   : > { %s995_s26 = scalar_select %p36_p7, %s891_s14, %s38_s21  }
  0x10   : > { %s1161_s25 = scalar_select %p990_p9, 1, 0 }
  0x11   : > { %p997_p11 = por %p125_p10, %p51_p3  ;;  %s151_s28 = sand.u32 1, %s891_s14  }
  0x12   : > { %s705_s29 = smul.u32 12, %s151_s28  ;;  %p1007_p0 = pnand %p722_p13, %p980_p4 }
  0x13   : > { %s1162_s27 = scalar_select %p997_p11, 1, 0 }
  0x14   : > { %s706_s30 = smul.u32 192, %s899_s16  ;;  %s155_s8 = scalar_lea.vmem [#allocation3], %s705_s29 }
  0x15   : > { %s163_s9 = sshll.u32 %s155_s8, 4  ;;  %s152_s10 = scalar_lea.sflag [#allocation4], %s151_s28  ;;  %s1017_s9 = int_to_ptr.vmem [resolvable:$true] %s163_s9 }
  0x16   : > { %s1015_s7 = scalar_lea.hbm %s1154_s0, %s706_s30  ;;  %p793_p3 = pneg %p1007_p0 }
  0x17   : > { %s791_s11 = scalar_lea.hbm %s1015_s7, 192  ;;  %s796_s21 = scalar_lea.hbm %s1154_s0, 384 }
  0x18   : > { %p792_p2 = scmp.ne.s32.totalorder %s1015_s7, %s791_s11  ;;  %p797_p6 = scmp.lt.u32.totalorder %s1015_s7, %s1154_s0 }
  0x19   : > { %p798_p7 = scmp.lt.u32.totalorder %s796_s21, %s791_s11  ;;  %p800_p13 = scmp.lt.u32.totalorder %s791_s11, %s1015_s7 }
  0x1a   : > { %p794_p4 = pnand %p793_p3, %p792_p2 }
  0x1b   : > { %p799_p10 = por %p798_p7, %p797_p6 }
  0x1c   : > { %p795_p5 = pneg %p794_p4 }
  0x1d   : > { %p801_p12 = por %p800_p13, %p799_p10 }
  0x1f   : > { %p802_p1 = pnand %p801_p12, %p795_p5 }
  0x21   : > { %805 = shalt.err (!%p802_p1)
}
  0x22   : > { %s806_s28 = scalar_lea.vmem %s1017_s9, 192  ;;  %s905_s29 = smov [#allocation3]  }
  0x23   : > { %p807_p2 = scmp.ne.s32.totalorder %s1017_s9, %s806_s28  ;;  %s811_s30 = sshll.u32 %s905_s29, 4  ;;  %s812_s30 = int_to_ptr.vmem [resolvable:$false] %s811_s30 }
  0x24   : > { %s813_s5 = scalar_lea.vmem %s812_s30, 384  ;;  %p814_p9 = scmp.lt.s32.totalorder %s1017_s9, %s812_s30 }
  0x25   : > { %p809_p4 = pnand %p807_p2, %p793_p3  ;;  %p815_p6 = scmp.lt.s32.totalorder %s813_s5, %s806_s28 }
  0x27   : > { %p810_p11 = pneg %p809_p4  ;;  %p816_p7 = por %p815_p6, %p814_p9 }
  0x29   : > { %p817_p10 = pnand %p816_p7, %p810_p11 }
  0x2b   : > { %820 = shalt.err (!%p817_p10)
}
  0x2c   : > { %717 = dma.hbm_to_vmem [thread:$0]  (!%p1007_p0), %s1015_s7, 192, %s1017_s9, %s152_s10  }
  0x2d   : > { %p168_p12 = scmp.lt.s32.totalorder %s903_s17, 3  ;;  %p1164_p1 = scmp.ge.s32.totalorder %s903_s17, 1 }
  0x2f   : > { %p169_p3 = pnand %p1164_p1, %p168_p12 }
  0x30   : > { %s1048_s6 = sand.u32 (!%p169_p3), 1, %s887_s13  }
  0x31   : > { %172 = sbr.rel (%p169_p3) target bundleno = 460 (0x1cc), region = 32  ;;  %s175_s11 = scalar_lea.sflag (!%p169_p3), [#allocation4], %s1048_s6 }
  0x32   : > { %s707_s8 = smul.u32 (!%p169_p3), 12, %s1048_s6 }
  0x34   : > { %s1052_s18 = scalar_lea.vmem (!%p169_p3), [#allocation3], %s707_s8 }
  0x38   : > { %874 = dma.done.wait (%p986_p8), %s175_s11, 192  }
  0x39   : > { %876 = vsyncadd (%p986_p8), %s175_s11, 4294967104  ;;  %v234_v0 = vld [vmem:[%s1052_s18 + $0x8] sm:$0xf]  ;;  %v211_v1 = vld [vmem:[%s1052_s18] sm:$0xff]  ;;  %s906_s4 = smov 126   ;;  %s907_s7 = smov 127  }
  0x3a   : > { %242 = vrot.lane.b32.xlu1 %v234_v0, %s906_s4  ;;  %219 = vrot.lane.b32.xlu0 %v211_v1, %s907_s7  ;;  %v237_v2 = vcombine.high %v211_v1, %v211_v1  ;;  %207 = vst [vmem:[#allocation2] sm:$0xf] %v211_v1  ;;  %vm209_vm0 = vcmask 257024   ;;  %v203_v3 = vld [vmem:[%s1052_s18 + $0x8] sm:$0xf]  ;;  %s908_s24 = smov 110   ;;  %v215_v7 = vcombine.low %v211_v1, %v211_v1 }
  0x3b   : > { %v787_v4 = vld [vmem:[%s1052_s18 + $0x8] ss:$0 sps:$4 sm:$0xff]   ;;  %210 = vst.msk [vmem:[#allocation2 + $0x10] sm:$0xf] %vm209_vm0, %v203_v3  ;;  %v909_v6 = vmov 0.0|0.0   ;;  %s910_s9 = smov 109  }
  0x3c   : > { %208 = vst [vmem:[#allocation2 + $0x8] sm:$0xf] %v237_v2  ;;  %v788_v5 = vld [vmem:[%s1052_s18 + $0x8] ss:$0 sps:$4 sm:$0xff]   ;;  %699 = vmatprep.subr.bf16.mxu1 %v909_v6  ;;  %s911_s10 = smov 108   ;;  %s912_s19 = smov 92  }
  0x3d   : > { %v275_v8 = vld [vmem:[%s1052_s18 + $0x8] sm:$0xf]  ;;  %s913_s21 = smov 91   ;;  %v914_v12 = vmov 0.0   ;;  %s915_s22 = smov 90   ;;  %vm916_vm1 = vmmov 0  }
  0x3e   : > { %240 = vrot.lane.b32.xlu1 %v237_v2, %s906_s4  ;;  %261 = vrot.lane.b32.xlu0 %v211_v1, %s908_s24  ;;  %v789_v9 = vld [vmem:[%s1052_s18 + $0x8] ss:$0 sps:$4 sm:$0xff]   ;;  %v917_v14 = vmov 0   ;;  %vm244_vm2 = vcmask 1031168   ;;  %vm231_vm3 = vcmask 261124   ;;  %vm265_vm4 = vcmask 900096  }
  0x3f   : > { %v316_v10 = vld [vmem:[%s1052_s18 + $0x8] sm:$0xf]  ;;  %476 = vmatprep.mubr.f32.mxu0 %v914_v12  ;;  %688 = vmatprep.mubr.msk.f32.mxu1 %vm916_vm1, %v914_v12  ;;  %vm223_vm5 = vcmask 1039360   ;;  %vm285_vm6 = vcmask 891904   ;;  %vm306_vm7 = vcmask 883712   ;;  %vm326_vm8 = vcmask 752640  }
  0x40   : > { %v790_v11 = vld [vmem:[%s1052_s18 + $0x8] ss:$0 sps:$4 sm:$0xff]   ;;  %784 = vset.pattern.permute.xlu0 %v917_v14  ;;  %vm347_vm9 = vcmask 744448   ;;  %vm367_vm10 = vcmask 736256   ;;  %vm402_vm11 = vcmask 1043456   ;;  %vm398_vm12 = vcmask 293888  }
  0x41   : > { %v357_v13 = vld [vmem:[%s1052_s18 + $0x8] sm:$0xf]  ;;  %s708_s5 = smul.u32 24, %s1048_s6  ;;  %vm558_vm13 = vcmask 261120   ;;  %p1165_p9 = scmp.ne.s32.totalorder %s1161_s25, 0 }
  0x42   : > { %263 = vrot.lane.b32.xlu1 %v787_v4, %s908_s24  ;;  %221 = vrot.lane.b32.xlu0 %v788_v5, %s907_s7  ;;  %v392_v15 = vld [vmem:[%s1156_s2] sm:$0xff]  ;;  %s709_s8 = smul.u32 384, %s895_s15  ;;  %s561_s15 = scalar_lea.sflag [#allocation5], %s1048_s6 }
  0x43   : > { %s200_s11 = scalar_lea.vmem [#allocation6], %s708_s5 }
  0x44   : > { %s577_s18 = sshll.u32 %s200_s11, 4  ;;  %s1107_s18 = int_to_ptr.vmem [resolvable:$true] %s577_s18 }
  0x46   : > { %238 = vrot.lane.b32.xlu1 %v211_v1, %s906_s4  ;;  %217 = vrot.lane.b32.xlu0 %v215_v7, %s907_s7 }
  0x4a   : > { %281 = vrot.lane.b32.xlu1 %v237_v2, %s910_s9  ;;  %259 = vrot.lane.b32.xlu0 %v215_v7, %s908_s24  ;;  %s1105_s24 = scalar_lea.hbm %s1157_s3, %s709_s8 }
  0x4e   : > { %302 = vrot.lane.b32.xlu1 %v211_v1, %s911_s10  ;;  %283 = vrot.lane.b32.xlu0 %v275_v8, %s910_s9 }
  0x52   : > { %322 = vrot.lane.b32.xlu1 %v237_v2, %s912_s19  ;;  %304 = vrot.lane.b32.xlu0 %v789_v9, %s911_s10 }
  0x56   : > { %343 = vrot.lane.b32.xlu1 %v211_v1, %s913_s21  ;;  %324 = vrot.lane.b32.xlu0 %v316_v10, %s912_s19  ;;  %v376_v10 = vld [vmem:[%s1155_s1] sm:$0xff] }
  0x5a   : > { %279 = vrot.lane.b32.xlu1 %v211_v1, %s910_s9  ;;  %345 = vrot.lane.b32.xlu0 %v790_v11, %s913_s21  ;;  %s821_s9 = scalar_lea.vmem %s1107_s18, 384 }
  0x5b   : > { %p822_p8 = scmp.ne.s32.totalorder %s1107_s18, %s821_s9 }
  0x5d   : > { %p823_p11 = pnand %p822_p8, %p1165_p9 }
  0x5e   : > { %320 = vrot.lane.b32.xlu1 %v211_v1, %s912_s19  ;;  %300 = vrot.lane.b32.xlu0 %v215_v7, %s911_s10  ;;  %s918_s10 = smov [#allocation6]  }
  0x5f   : > { %p824_p0 = pneg %p823_p11  ;;  %s825_s19 = sshll.u32 %s918_s10, 4  ;;  %s826_s19 = int_to_ptr.vmem [resolvable:$false] %s825_s19 }
  0x60   : > { %p828_p5 = scmp.lt.s32.totalorder %s1107_s18, %s826_s19 }
  0x62   : > { %363 = vrot.lane.b32.xlu1 %v237_v2, %s915_s22  ;;  %341 = vrot.lane.b32.xlu0 %v215_v7, %s913_s21  ;;  %s827_s21 = scalar_lea.vmem %s826_s19, 768 }
  0x63   : > { %p829_p13 = scmp.lt.s32.totalorder %s827_s21, %s821_s9 }
  0x65   : > { %p830_p2 = por %p829_p13, %p828_p5 }
  0x66   : > { %361 = vrot.lane.b32.xlu1 %v211_v1, %s915_s22  ;;  %365 = vrot.lane.b32.xlu0 %v357_v13, %s915_s22 }
  0x67   : > { %p831_p4 = pnand %p830_p2, %p824_p0 }
  0x6a   : > { %395 = vperm.xlu0 %784, %v392_v15  }
  0xac   : > { %v243_v16 = vpop.permute.xlu1 %242  ;;  %v220_v17 = vpop.permute.xlu0 %219 }
  0xad   : > { %252 = vst.msk [vmem:[#allocation2 + $0x28] sm:$0xf] %vm209_vm0, %v243_v16 }
  0xb0   : > { %v241_v18 = vpop.permute.xlu1 %240  ;;  %v262_v19 = vpop.permute.xlu0 %261 }
  0xb1   : > { %v246_v20 = vsel %vm244_vm2, %v241_v18, %v243_v16 }
  0xb2   : > { %251 = vst [vmem:[#allocation2 + $0x20] sm:$0xf] %v246_v20 }
  0xb4   : > { %v264_v21 = vpop.permute.xlu1 %263  ;;  %v222_v22 = vpop.permute.xlu0 %221 }
  0xb5   : > { %v267_v23 = vsel %vm265_vm4, %v262_v19, %v264_v21  ;;  %273 = vst.msk [vmem:[#allocation2 + $0x28] sm:$0xf0] %vm231_vm3, %v264_v21  ;;  %v225_v24 = vsel %vm223_vm5, %v220_v17, %v222_v22  ;;  %232 = vst.msk [vmem:[#allocation2 + $0x10] sm:$0xf0] %vm231_vm3, %v222_v22 }
  0xb6   : > { %272 = vst [vmem:[#allocation2 + $0x20] sm:$0xf0] %v267_v23  ;;  %230 = vst [vmem:[#allocation2 + $0x8] sm:$0xf0] %v225_v24 }
  0xb8   : > { %v239_v25 = vpop.permute.xlu1 %238  ;;  %v218_v26 = vpop.permute.xlu0 %217 }
  0xb9   : > { %v245_v27 = vsel %vm244_vm2, %v239_v25, %v241_v18  ;;  %v224_v28 = vsel %vm223_vm5, %v218_v26, %v220_v17 }
  0xba   : > { %250 = vst [vmem:[#allocation2 + $0x18] sm:$0xf] %v245_v27  ;;  %229 = vst [vmem:[#allocation2] sm:$0xf0] %v224_v28 }
  0xbc   : > { %v282_v29 = vpop.permute.xlu1 %281  ;;  %v260_v30 = vpop.permute.xlu0 %259  ;;  %v379_v31 = vld [vmem:[#allocation2 + $0x10] sm:$0xff]  ;;  %v382_v32 = vld [vmem:[#allocation2 + $0x28] sm:$0xff] }
  0xbd   : > { %v266_v33 = vsel %vm265_vm4, %v260_v30, %v262_v19  ;;  %v700_v34 = vpack.c.bf16 %v382_v32, %v379_v31  ;;  %v378_v35 = vld [vmem:[#allocation2 + $0x8] sm:$0xff]  ;;  %v381_v36 = vld [vmem:[#allocation2 + $0x20] sm:$0xff] }
  0xbe   : > { %271 = vst [vmem:[#allocation2 + $0x18] sm:$0xf0] %v266_v33  ;;  %v691_v37 = vpack.c.bf16 %v381_v36, %v378_v35 }
  0xbf   : > { %701 = vmatpush3.bf16.msra.mxu1 %v700_v34 }
  0xc0   : > { %v303_v38 = vpop.permute.xlu1 %302  ;;  %v284_v39 = vpop.permute.xlu0 %283  ;;  %692 = vmatprep.subr.bf16.mxu0 %v691_v37  ;;  %702 = vmatprep.subr.bf16.mxu1 %v909_v6 }
  0xc1   : > { %v287_v40 = vsel %vm285_vm6, %v282_v29, %v284_v39  ;;  %293 = vst.msk [vmem:[#allocation2 + $0x40] sm:$0xf] %vm209_vm0, %v284_v39  ;;  %v377_v44 = vld [vmem:[#allocation2] sm:$0xff] }
  0xc2   : > { %292 = vst [vmem:[#allocation2 + $0x38] sm:$0xf] %v287_v40 }
  0xc4   : > { %v323_v41 = vpop.permute.xlu1 %322  ;;  %v305_v42 = vpop.permute.xlu0 %304 }
  0xc5   : > { %v308_v43 = vsel %vm306_vm7, %v303_v38, %v305_v42  ;;  %314 = vst.msk [vmem:[#allocation2 + $0x40] sm:$0xf0] %vm231_vm3, %v305_v42  ;;  %v380_v45 = vld [vmem:[#allocation2 + $0x18] sm:$0xff] }
  0xc6   : > { %313 = vst [vmem:[#allocation2 + $0x38] sm:$0xf0] %v308_v43  ;;  %v693_v46 = vpack.c.bf16 %v380_v45, %v377_v44 }
  0xc8   : > { %v344_v47 = vpop.permute.xlu1 %343  ;;  %v325_v48 = vpop.permute.xlu0 %324  ;;  %694 = vmatpush1.bf16.msra.mxu0 %v693_v46 }
  0xc9   : > { %v328_v49 = vsel %vm326_vm8, %v323_v41, %v325_v48  ;;  %334 = vst.msk [vmem:[#allocation2 + $0x58] sm:$0xf] %vm209_vm0, %v325_v48 }
  0xca   : > { %333 = vst [vmem:[#allocation2 + $0x50] sm:$0xf] %v328_v49 }
  0xcc   : > { %v280_v50 = vpop.permute.xlu1 %279  ;;  %v346_v51 = vpop.permute.xlu0 %345  ;;  %v385_v60 = vld [vmem:[#allocation2 + $0x40] sm:$0xff] }
  0xcd   : > { %v286_v52 = vsel %vm285_vm6, %v280_v50, %v282_v29  ;;  %v349_v53 = vsel %vm347_vm9, %v344_v47, %v346_v51  ;;  %355 = vst.msk [vmem:[#allocation2 + $0x58] sm:$0xf0] %vm231_vm3, %v346_v51  ;;  %v384_v0 = vld [vmem:[#allocation2 + $0x38] sm:$0xff] }
  0xce   : > { %291 = vst [vmem:[#allocation2 + $0x30] sm:$0xf] %v286_v52  ;;  %354 = vst [vmem:[#allocation2 + $0x50] sm:$0xf0] %v349_v53 }
  0xd0   : > { %v321_v54 = vpop.permute.xlu1 %320  ;;  %v301_v55 = vpop.permute.xlu0 %300 }
  0xd1   : > { %v327_v56 = vsel %vm326_vm8, %v321_v54, %v323_v41  ;;  %v307_v57 = vsel %vm306_vm7, %v301_v55, %v303_v38 }
  0xd2   : > { %332 = vst [vmem:[#allocation2 + $0x48] sm:$0xf] %v327_v56  ;;  %312 = vst [vmem:[#allocation2 + $0x30] sm:$0xf0] %v307_v57 }
  0xd4   : > { %v364_v58 = vpop.permute.xlu1 %363  ;;  %v342_v59 = vpop.permute.xlu0 %341  ;;  %v388_v61 = vld [vmem:[#allocation2 + $0x58] sm:$0xff] }
  0xd5   : > { %v348_v62 = vsel %vm347_vm9, %v342_v59, %v344_v47  ;;  %v703_v63 = vpack.c.bf16 %v388_v61, %v385_v60  ;;  %v387_v1 = vld [vmem:[#allocation2 + $0x50] sm:$0xff] }
  0xd6   : > { %353 = vst [vmem:[#allocation2 + $0x48] sm:$0xf0] %v348_v62  ;;  %v695_v2 = vpack.c.bf16 %v387_v1, %v384_v0 }
  0xd7   : > { %704 = vmatpush3.bf16.msra.mxu1 %v703_v63 }
  0xd8   : > { %v362_v3 = vpop.permute.xlu1 %361  ;;  %v366_v4 = vpop.permute.xlu0 %365  ;;  %696 = vmatprep.subr.bf16.mxu0 %v695_v2  ;;  %686 = vmatprep.subr.mxu1 %v914_v12 }
  0xd9   : > { %v368_v5 = vsel %vm367_vm10, %v362_v3, %v364_v58  ;;  %v369_v6 = vsel %vm367_vm10, %v364_v58, %v366_v4  ;;  %375 = vst.msk [vmem:[#allocation2 + $0x70] sm:$0xf] %vm209_vm0, %v366_v4  ;;  %v383_v7 = vld [vmem:[#allocation2 + $0x30] sm:$0xff] }
  0xda   : > { %373 = vst [vmem:[#allocation2 + $0x60] sm:$0xf] %v368_v5  ;;  %374 = vst [vmem:[#allocation2 + $0x68] sm:$0xf] %v369_v6 }
  0xdd   : > { %v386_v8 = vld [vmem:[#allocation2 + $0x48] sm:$0xff] }
  0xde   : > { %v697_v9 = vpack.c.bf16 %v386_v8, %v383_v7 }
  0xe0   : > { %698 = vmatpush1.bf16.msra.mxu0 %v697_v9  ;;  %v391_v11 = vld [vmem:[#allocation2 + $0x70] sm:$0xf] }
  0xe1   : > { %v390_v12 = vld [vmem:[#allocation2 + $0x68] sm:$0xf]  ;;  %687 = vmatpush3.msk.msra.mxu1 %vm402_vm11, %v391_v11  ;;  %v389_v13 = vld [vmem:[#allocation2 + $0x60] sm:$0xf] }
  0xe2   : > { %664 = vmatprep.subr.msk.mxu0 %vm402_vm11, %v390_v12  ;;  %689 = vmatmul.mubr.msk.f32.vlgmr.msra.gmra.mrb[0].mxu1 %vm398_vm12, %v376_v10 }
  0xe4   : > { %665 = vmatpush1.msk.msra.mxu0 %vm402_vm11, %v389_v13 }
  0xe5   : > { %666 = vmatmul.mubr.msk.f32.vlgmr.msra.gmra.mrb[0].mxu0 %vm398_vm12, %v376_v10 }
  0xe9   : > { %v396_v14 = vpop.permute.xlu0 %395 }
 0x1b5   : > { %v549_v15 = vpop.f32.mrb[0].mxu1 }
 0x1b6   : > { %v550_v16 = vadd.f32 %v549_v15, %v396_v14  ;;  %v690_v17 = vpop.f32.mrb[1].mxu1 }
 0x1b8   : > { %v478_v18 = vpop.f32.mrb[0].mxu0  ;;  %v555_v19 = vmax.f32 %v550_v16, 0.0 }
 0x1b9   : > { %v479_v20 = vadd.f32 %v478_v18, %v396_v14  ;;  %v480_v21 = vpop.f32.mrb[1].mxu0 }
 0x1ba   : > { %559 = vst.msk [vmem:[%s200_s11 + $0x10] sm:$0xff] %vm558_vm13, %v555_v19  ;;  %v481_v22 = vadd.f32 %v480_v21, %v396_v14 }
 0x1bb   : > { %v553_v23 = vmax.f32 %v479_v20, 0.0 }
 0x1bc   : > { %v554_v24 = vmax.f32 %v481_v22, 0.0 }
 0x1bd   : > { %556 = vst [vmem:[%s200_s11] sm:$0xff] %v553_v23 }
 0x1be   : > { %557 = vst [vmem:[%s200_s11 + $0x8] sm:$0xff] %v554_v24 }
 0x1bf   : > { %834 = shalt.err (!%p831_p4)
}
 0x1c0   : > { %s835_s6 = scalar_lea.hbm %s1105_s24, 384  ;;  %s839_s28 = scalar_lea.hbm %s1157_s3, 768 }
 0x1c1   : > { %p836_p6 = scmp.ne.s32.totalorder %s1105_s24, %s835_s6  ;;  %p840_p12 = scmp.lt.u32.totalorder %s1105_s24, %s1157_s3 }
 0x1c2   : > { %p841_p1 = scmp.lt.u32.totalorder %s839_s28, %s835_s6  ;;  %p843_p8 = scmp.lt.u32.totalorder %s835_s6, %s1105_s24 }
 0x1c3   : > { %p837_p7 = pnand %p836_p6, %p1165_p9 }
 0x1c4   : > { %p842_p3 = por %p841_p1, %p840_p12 }
 0x1c5   : > { %p838_p10 = pneg %p837_p7 }
 0x1c6   : > { %p844_p11 = por %p843_p8, %p842_p3 }
 0x1c8   : > { %p845_p0 = pnand %p844_p11, %p838_p10 }
 0x1ca   : > { %848 = shalt.err (!%p845_p0)
}
 0x1cb   : > { %712 = dma.vmem_to_hbm [thread:$0]  (%p1165_p9), %s1107_s18, 384, %s1105_s24, %s561_s15  }
 0x1cc PF: > { %s589_s5 = sand.u32 1, %s883_s12   ;;  %p1166_p5 = scmp.ne.s32.totalorder %s1162_s27, 0 }
 0x1cd   : > { %p1167_p13 = scmp.ge.s32.totalorder %s903_s17, 2  ;;  %s590_s8 = scalar_lea.sflag [#allocation5], %s589_s5 }
 0x1cf   : > { %p719_p2 = pnand %p1167_p13, %p1166_p5 }
 0x1d1   : > { %878 = dma.done.wait (!%p719_p2), %s590_s8, 384  }
 0x1d2   : > { %880 = vsyncadd (!%p719_p2), %s590_s8, 4294966912  ;;  %s19_s17 = sadd.s32 1, %s903_s17   ;;  %s1168_s12 = smov %s887_s13 }
 0x1d3   : > { %p16_p4 = scmp.ge.s32.totalorder %s19_s17, 4   ;;  %s1169_s13 = smov %s891_s14 }
 0x1d4   : > { %s1170_s14 = smov %s995_s26  ;;  %s1171_s15 = smov %s899_s16 }
 0x1d5   : > { %s1172_s16 = smov %s1174_s20  ;;  %18 = sbr.rel (!%p16_p4) target bundleno = 6 (0x6), region = 77 }
 0x1dc   :  { %595 = vsyncpa [#allocation4], 1 }
 0x1dd   :  { %597 = vsyncpa [#allocation4 + $0x1], 1 }
 0x1de   :  { %598 = vsyncpa [#allocation5], 1 }
 0x1df   :  { %600 = vsyncpa [#allocation5 + $0x1], 1 }

</bundles_post_ra>
